<compile_context>
chip_gen: v7x
topology: tpu7x:2x2x1
jax: 0.10.0
libtpu: 0.0.40
codegen_flags: <defaults>
</compile_context>

<pallas_src>
import functools
import math

import jax
import jax.numpy as jnp
from jax.experimental import pallas as pl
from jax.experimental.pallas import tpu as pltpu

_GELU_C = math.sqrt(2.0 / math.pi)  # Python float (never captured as a jnp const)


def _round_up(v, m):
    return ((v + m - 1) // m) * m


def _gelu_tanh(x):
    return 0.5 * x * (1.0 + jnp.tanh(_GELU_C * (x + 0.044715 * x * x * x)))


def _layer_norm(x, g, b, eps):
    mu = jnp.mean(x, axis=-1, keepdims=True)
    xc = x - mu
    var = jnp.mean(xc * xc, axis=-1, keepdims=True)
    return xc * jax.lax.rsqrt(var + eps) * g + b


# ---------------------------------------------------------------------------
# Kernel bodies
# ---------------------------------------------------------------------------
def _embed_ln_kernel(we_ref, pe_ref, g_ref, b_ref, o_ref, *, eps):
    # LayerNorm(word_emb + (pos_emb + type_emb)) — BERT embedding block (eval mode)
    x = we_ref[...] + pe_ref[...]
    o_ref[...] = _layer_norm(x, g_ref[...], b_ref[...], eps)


def _qkv_kernel(x_ref, w_ref, b_ref, o_ref):
    # fused Q|K|V projection: one [H, 3H] MXU call + bias
    o_ref[...] = (
        jnp.dot(x_ref[...], w_ref[...], preferred_element_type=jnp.float32)
        + b_ref[...]
    )


def _mha_kernel(q_ref, k_ref, v_ref, bias_ref, o_ref, *, scale):
    # one (batch, head): softmax(q k^T * scale + mask_bias) @ v
    q = q_ref[...]                                   # [S, dh]
    k = k_ref[...]
    v = v_ref[...]
    logits = jnp.einsum("qd,kd->qk", q, k,
                        preferred_element_type=jnp.float32) * scale
    logits = logits + bias_ref[...]                  # [1, S] additive key mask
    m = jnp.max(logits, axis=1, keepdims=True)
    p = jnp.exp(logits - m)
    denom = jnp.sum(p, axis=1, keepdims=True)
    probs = p * pl.reciprocal(denom, approx=True)
    o_ref[...] = jnp.dot(probs, v, preferred_element_type=jnp.float32)


def _attn_out_ln_kernel(ctx_ref, res_ref, wo_ref, bo_ref, g_ref, b_ref, o_ref, *, eps):
    # output projection + residual + LayerNorm (fused)
    y = (jnp.dot(ctx_ref[...], wo_ref[...], preferred_element_type=jnp.float32)
         + bo_ref[...] + res_ref[...])
    o_ref[...] = _layer_norm(y, g_ref[...], b_ref[...], eps)


def _ffn_ln_kernel(x_ref, w1_ref, b1_ref, w2_ref, b2_ref, g_ref, b_ref, o_ref, *, eps):
    # FFN: GELU(x W1 + b1) W2 + b2 + residual, then LayerNorm (fused)
    x = x_ref[...]
    h = jnp.dot(x, w1_ref[...], preferred_element_type=jnp.float32) + b1_ref[...]
    h = _gelu_tanh(h)
    y = jnp.dot(h, w2_ref[...], preferred_element_type=jnp.float32) + b2_ref[...] + x
    o_ref[...] = _layer_norm(y, g_ref[...], b_ref[...], eps)


# ---------------------------------------------------------------------------
# pallas_call helpers
# ---------------------------------------------------------------------------
def _rowwise_call(kernel, row_args, bcast_args, out_cols, tm):
    """Row-tiled call: row_args are [R_pad, C] (tiled over rows), bcast_args are
    2-D weights/biases fetched whole (same block every grid step)."""
    R_pad = row_args[0].shape[0]
    in_specs = (
        [pl.BlockSpec((tm, a.shape[1]), lambda i: (i, 0)) for a in row_args]
        + [pl.BlockSpec(a.shape, lambda i: (0, 0)) for a in bcast_args]
    )
    return pl.pallas_call(
        kernel,
        out_shape=jax.ShapeDtypeStruct((R_pad, out_cols), jnp.float32),
        grid=(R_pad // tm,),
        in_specs=in_specs,
        out_specs=pl.BlockSpec((tm, out_cols), lambda i: (i, 0)),
        compiler_params=pltpu.CompilerParams(dimension_semantics=("parallel",)),
    )(*row_args, *bcast_args)


def _mha_call(q, k, v, mask_bias, scale):
    B, nh, S, dh = q.shape
    qkv_spec = pl.BlockSpec((None, None, S, dh), lambda b, h: (b, h, 0, 0))
    return pl.pallas_call(
        functools.partial(_mha_kernel, scale=scale),
        out_shape=jax.ShapeDtypeStruct((B, nh, S, dh), jnp.float32),
        grid=(B, nh),
        in_specs=[qkv_spec, qkv_spec, qkv_spec,
                  pl.BlockSpec((None, 1, S), lambda b, h: (b, 0, 0))],
        out_specs=pl.BlockSpec((None, None, S, dh), lambda b, h: (b, h, 0, 0)),
        compiler_params=pltpu.CompilerParams(
            dimension_semantics=("parallel", "parallel")),
    )(q, k, v, mask_bias)


# ---------------------------------------------------------------------------
# BertEncoder.forward: returns last_hidden_state [B, S, H]
# ---------------------------------------------------------------------------
def bert_encoder_forward(token_id, attention_mask, params, *, num_heads,
                         layer_norm_eps=1e-12, block_rows=256):
    B, S = token_id.shape
    H = params["word_emb"].shape[1]
    dh = H // num_heads
    R = B * S

    # ---- embeddings (gather in XLA, sum + LayerNorm fused in Pallas) ----
    we = jnp.take(params["word_emb"], token_id.reshape(-1), axis=0)          # [R, H]
    pos = params["pos_emb"][:S]                                              # [S, H]
    pe = jnp.tile(pos, (B, 1)) + params["type_emb"][0][None, :]              # [R, H]

    R_pad = _round_up(R, 8)
    tm = min(block_rows, R_pad)
    R_pad = _round_up(R_pad, tm)

    def pad_rows(a):
        return jnp.zeros((R_pad, a.shape[1]), a.dtype).at[: a.shape[0]].set(a)

    x = _rowwise_call(
        functools.partial(_embed_ln_kernel, eps=layer_norm_eps),
        [pad_rows(we), pad_rows(pe)],
        [params["emb_ln_g"], params["emb_ln_b"]],
        H, tm)                                                               # [R_pad, H]

    # additive attention-mask bias over key positions, shape [B, 1, S]
    mask_bias = ((attention_mask.astype(jnp.float32) - 1.0) * 1.0e9)[:, None, :]
    scale = 1.0 / math.sqrt(dh)

    for lyr in params["layers"]:
        # fused QKV projection
        qkv = _rowwise_call(_qkv_kernel, [x], [lyr["wqkv"], lyr["bqkv"]], 3 * H, tm)
        qkv = qkv[:R].reshape(B, S, 3, num_heads, dh)
        q = jnp.transpose(qkv[:, :, 0], (0, 2, 1, 3))                        # [B,nh,S,dh]
        k = jnp.transpose(qkv[:, :, 1], (0, 2, 1, 3))
        v = jnp.transpose(qkv[:, :, 2], (0, 2, 1, 3))

        # per-(batch, head) masked softmax attention
        ctx = _mha_call(q, k, v, mask_bias, scale)                           # [B,nh,S,dh]
        ctx = jnp.transpose(ctx, (0, 2, 1, 3)).reshape(R, H)

        # attention output projection + residual + LayerNorm
        x = _rowwise_call(
            functools.partial(_attn_out_ln_kernel, eps=layer_norm_eps),
            [pad_rows(ctx), x],
            [lyr["wo"], lyr["bo"], lyr["attn_ln_g"], lyr["attn_ln_b"]],
            H, tm)

        # GELU FFN + residual + LayerNorm
        x = _rowwise_call(
            functools.partial(_ffn_ln_kernel, eps=layer_norm_eps),
            [x],
            [lyr["w1"], lyr["b1"], lyr["w2"], lyr["b2"],
             lyr["ffn_ln_g"], lyr["ffn_ln_b"]],
            H, tm)

    return x[:R].reshape(B, S, H)


# ---------------------------------------------------------------------------
# Deterministic random BERT weights (same architecture as BertModel, eval mode)
# ---------------------------------------------------------------------------
def init_bert_params(key, *, vocab, max_pos, hidden, layers, intermediate):
    def nrm(k, shape, std=0.02):
        return std * jax.random.normal(k, shape, jnp.float32)

    keys = jax.random.split(key, 3 + 8 * layers)
    params = {
        "word_emb": nrm(keys[0], (vocab, hidden)),
        "pos_emb": nrm(keys[1], (max_pos, hidden)),
        "type_emb": nrm(keys[2], (2, hidden)),
        "emb_ln_g": jnp.ones((1, hidden), jnp.float32),
        "emb_ln_b": jnp.zeros((1, hidden), jnp.float32),
        "layers": [],
    }
    for l in range(layers):
        k = keys[3 + 8 * l: 3 + 8 * (l + 1)]
        params["layers"].append({
            "wqkv": nrm(k[0], (hidden, 3 * hidden)),
            "bqkv": nrm(k[1], (1, 3 * hidden)),
            "wo": nrm(k[2], (hidden, hidden)),
            "bo": nrm(k[3], (1, hidden)),
            "attn_ln_g": jnp.ones((1, hidden), jnp.float32),
            "attn_ln_b": jnp.zeros((1, hidden), jnp.float32),
            "w1": nrm(k[4], (hidden, intermediate)),
            "b1": nrm(k[5], (1, intermediate)),
            "w2": nrm(k[6], (intermediate, hidden)),
            "b2": nrm(k[7], (1, hidden)),
            "ffn_ln_g": jnp.ones((1, hidden), jnp.float32),
            "ffn_ln_b": jnp.zeros((1, hidden), jnp.float32),
        })
    return params


# ---------------------------------------------------------------------------
# Pure-JAX reference (same math, no Pallas) for a correctness check
# ---------------------------------------------------------------------------
def _reference(token_id, attention_mask, params, *, num_heads, eps=1e-12):
    B, S = token_id.shape
    H = params["word_emb"].shape[1]
    dh = H // num_heads

    def ln(x, g, b):
        return _layer_norm(x, g, b, eps)

    x = (params["word_emb"][token_id]
         + params["pos_emb"][:S][None]
         + params["type_emb"][0][None, None])
    x = ln(x, params["emb_ln_g"][0], params["emb_ln_b"][0])

    bias = ((attention_mask.astype(jnp.float32) - 1.0) * 1.0e9)[:, None, None, :]
    scale = 1.0 / math.sqrt(dh)

    for lyr in params["layers"]:
        qkv = x @ lyr["wqkv"] + lyr["bqkv"][0]
        qkv = qkv.reshape(B, S, 3, num_heads, dh)
        q = jnp.transpose(qkv[:, :, 0], (0, 2, 1, 3))
        k = jnp.transpose(qkv[:, :, 1], (0, 2, 1, 3))
        v = jnp.transpose(qkv[:, :, 2], (0, 2, 1, 3))
        logits = jnp.einsum("bhqd,bhkd->bhqk", q, k) * scale + bias
        probs = jax.nn.softmax(logits, axis=-1)
        ctx = jnp.einsum("bhqk,bhkd->bhqd", probs, v)
        ctx = jnp.transpose(ctx, (0, 2, 1, 3)).reshape(B, S, H)
        x = ln(ctx @ lyr["wo"] + lyr["bo"][0] + x,
               lyr["attn_ln_g"][0], lyr["attn_ln_b"][0])
        h = _gelu_tanh(x @ lyr["w1"] + lyr["b1"][0])
        x = ln(h @ lyr["w2"] + lyr["b2"][0] + x,
               lyr["ffn_ln_g"][0], lyr["ffn_ln_b"][0])
    return x


if __name__ == "__main__":
    # small BERT-like config: batch=2, seq=16, hidden=128 (lane-dense), 4 heads,
    # 2 layers, intermediate=512, vocab=128
    B, S = 2, 16
    HIDDEN, HEADS, LAYERS, INTER, VOCAB, MAX_POS = 128, 4, 2, 512, 128, 64

    key = jax.random.PRNGKey(0)
    kp, kt = jax.random.split(key)
    params = init_bert_params(kp, vocab=VOCAB, max_pos=MAX_POS, hidden=HIDDEN,
                              layers=LAYERS, intermediate=INTER)

    token_id = jax.random.randint(kt, (B, S), 0, VOCAB, dtype=jnp.int32)
    lengths = jnp.array([S, S - 4], jnp.int32)          # second sequence is padded
    mask = (jnp.arange(S)[None, :] < lengths[:, None]).astype(jnp.int32)

    out = bert_encoder_forward(token_id, mask, params, num_heads=HEADS)
    out = jax.block_until_ready(out)

    ref = _reference(token_id, mask, params, num_heads=HEADS)
    assert out.shape == (B, S, HIDDEN)
    max_err = float(jnp.max(jnp.abs(out - ref)))
    assert jnp.allclose(out, ref, atol=1e-2, rtol=1e-2), max_err

    print("KERNEL_OK")
</pallas_src>

<mosaic_0001>
module attributes {stable_mosaic.version = 11 : i64} {
  func.func @_embed_ln_kernel(%arg0: i32, %arg1: memref<32x128xf32, #tpu.memory_space<vmem>>, %arg2: memref<32x128xf32, #tpu.memory_space<vmem>>, %arg3: memref<1x128xf32, #tpu.memory_space<vmem>>, %arg4: memref<1x128xf32, #tpu.memory_space<vmem>>, %arg5: memref<32x128xf32, #tpu.memory_space<vmem>>) attributes {dimension_semantics = [#tpu.dimension_semantics<parallel>], iteration_bounds = array<i64: 1>, scalar_prefetch = 0 : i64, scratch_operands = 0 : i64, tpu.core_type = #tpu.core_type<tc>, window_params = [{transform_indices = @transform_0, window_bounds = array<i64: 32, 128>}, {transform_indices = @transform_1, window_bounds = array<i64: 32, 128>}, {pipeline_mode = #tpu.pipeline_mode<synchronous>, transform_indices = @transform_2, window_bounds = array<i64: 1, 128>}, {pipeline_mode = #tpu.pipeline_mode<synchronous>, transform_indices = @transform_3, window_bounds = array<i64: 1, 128>}, {transform_indices = @transform_4, window_bounds = array<i64: 32, 128>}]} {
    %c0 = arith.constant 0 : index
    %c0_0 = arith.constant 0 : index
    %0 = vector.load %arg1[%c0, %c0_0] : memref<32x128xf32, #tpu.memory_space<vmem>>, vector<32x128xf32>
    %c0_1 = arith.constant 0 : index
    %c0_2 = arith.constant 0 : index
    %1 = vector.load %arg2[%c0_1, %c0_2] : memref<32x128xf32, #tpu.memory_space<vmem>>, vector<32x128xf32>
    %2 = arith.addf %0, %1 : vector<32x128xf32>
    %c0_3 = arith.constant 0 : index
    %c0_4 = arith.constant 0 : index
    %3 = vector.load %arg3[%c0_3, %c0_4] : memref<1x128xf32, #tpu.memory_space<vmem>>, vector<1x128xf32>
    %c0_5 = arith.constant 0 : index
    %c0_6 = arith.constant 0 : index
    %4 = vector.load %arg4[%c0_5, %c0_6] : memref<1x128xf32, #tpu.memory_space<vmem>>, vector<1x128xf32>
    %cst = arith.constant dense<0.000000e+00> : vector<32xf32>
    %5 = vector.multi_reduction <add>, %2, %cst [1] : vector<32x128xf32> to vector<32xf32>
    %6 = vector.shape_cast %5 : vector<32xf32> to vector<32x1xf32>
    %cst_7 = arith.constant 1.280000e+02 : f32
    %7 = vector.broadcast %cst_7 : f32 to vector<32x1xf32>
    %8 = arith.divf %6, %7 : vector<32x1xf32>
    %9 = vector.broadcast %8 : vector<32x1xf32> to vector<32x128xf32>
    %10 = arith.subf %2, %9 : vector<32x128xf32>
    %11 = arith.mulf %10, %10 : vector<32x128xf32>
    %cst_8 = arith.constant dense<0.000000e+00> : vector<32xf32>
    %12 = vector.multi_reduction <add>, %11, %cst_8 [1] : vector<32x128xf32> to vector<32xf32>
    %13 = vector.shape_cast %12 : vector<32xf32> to vector<32x1xf32>
    %cst_9 = arith.constant 1.280000e+02 : f32
    %14 = vector.broadcast %cst_9 : f32 to vector<32x1xf32>
    %15 = arith.divf %13, %14 : vector<32x1xf32>
    %cst_10 = arith.constant 9.99999996E-13 : f32
    %16 = vector.broadcast %cst_10 : f32 to vector<32x1xf32>
    %17 = arith.addf %15, %16 : vector<32x1xf32>
    %18 = math.rsqrt %17 : vector<32x1xf32>
    %19 = vector.broadcast %18 : vector<32x1xf32> to vector<32x128xf32>
    %20 = arith.mulf %10, %19 : vector<32x128xf32>
    %21 = vector.broadcast %3 : vector<1x128xf32> to vector<32x128xf32>
    %22 = arith.mulf %20, %21 : vector<32x128xf32>
    %23 = vector.broadcast %4 : vector<1x128xf32> to vector<32x128xf32>
    %24 = arith.addf %22, %23 : vector<32x128xf32>
    %c0_11 = arith.constant 0 : index
    %c0_12 = arith.constant 0 : index
    %25 = vector.load %arg5[%c0_11, %c0_12] : memref<32x128xf32, #tpu.memory_space<vmem>>, vector<32x128xf32>
    tpu.vector_store %arg5[%c0_11, %c0_12], %24 {strides = array<i32>} : memref<32x128xf32, #tpu.memory_space<vmem>>, vector<32x128xf32>,
    return
  }
  func.func @transform_0(%arg0: i32) -> (i32, i32) {
    %c0_i32 = arith.constant 0 : i32
    %c0_i32_0 = arith.constant 0 : i32
    return %arg0, %c0_i32 : i32, i32
  }
  func.func @transform_1(%arg0: i32) -> (i32, i32) {
    %c0_i32 = arith.constant 0 : i32
    %c0_i32_0 = arith.constant 0 : i32
    return %arg0, %c0_i32 : i32, i32
  }
  func.func @transform_2(%arg0: i32) -> (i32, i32) {
    %c0_i32 = arith.constant 0 : i32
    %c0_i32_0 = arith.constant 0 : i32
    %c0_i32_1 = arith.constant 0 : i32
    return %c0_i32, %c0_i32_0 : i32, i32
  }
  func.func @transform_3(%arg0: i32) -> (i32, i32) {
    %c0_i32 = arith.constant 0 : i32
    %c0_i32_0 = arith.constant 0 : i32
    %c0_i32_1 = arith.constant 0 : i32
    return %c0_i32, %c0_i32_0 : i32, i32
  }
  func.func @transform_4(%arg0: i32) -> (i32, i32) {
    %c0_i32 = arith.constant 0 : i32
    %c0_i32_0 = arith.constant 0 : i32
    return %arg0, %c0_i32 : i32, i32
  }
}

</mosaic_0001>

<bundles_post_ra>
// kernel: tpu_custom_call.1
= control target key start
LH: loop header
LB: loop body
LE: loop exit
PB: predicated region body
PF: predicated region fallthrough
CT: control target
= control target key end

     0   :  { %9 = vsyncpa [#allocation3], 0  ;;  %s315_s0 = inlined_call_operand.hbm [shape: f32[32,128], index: 0, kind: input, shape index: {}]   ;;  %s316_s1 = inlined_call_operand.hbm [shape: f32[32,128], index: 1, kind: input, shape index: {}]   ;;  %s317_s2 = inlined_call_operand.vmem [shape: f32[1,128], index: 2, kind: input, shape index: {}]   ;;  %s318_s3 = inlined_call_operand.vmem [shape: f32[1,128], index: 3, kind: input, shape index: {}]   ;;  %s319_s4 = inlined_call_operand.hbm [shape: f32[32,128], index: 4, kind: output, shape index: {}]  }
   0x1   :  { %10 = vsyncpa [#allocation6], 0 }
   0x2   :  { %11 = vsyncpa [#allocation4], 0  ;;  %s234_s15 = smov [#allocation2]   ;;  %s162_s19 = scalar_lea.hbm %s315_s0, 512 }
   0x3   :  { %s17_s16 = sshll.u32 %s234_s15, 4  ;;  %p163_p0 = scmp.ne.s32.totalorder %s315_s0, %s162_s19  ;;  %s18_s16 = int_to_ptr.vmem [resolvable:$true] %s17_s16 }
   0x4   :  { %p166_p1 = scmp.lt.u32.totalorder %s162_s19, %s315_s0 }
   0x6   :  { %p168_p2 = pnand %p166_p1, %p163_p0 }
   0x8   :  { %171 = shalt.err (!%p168_p2)
}
   0x9   :  { %s172_s24 = scalar_lea.vmem %s18_s16, 512  ;;  %p177_p4 = scmp.lt.s32.totalorder %s18_s16, %s18_s16 }
   0xa   :  { %p173_p3 = scmp.ne.s32.totalorder %s18_s16, %s172_s24  ;;  %p178_p5 = scmp.lt.s32.totalorder %s172_s24, %s172_s24 }
   0xc   :  { %p179_p6 = por %p178_p5, %p177_p4 }
   0xe   :  { %p180_p7 = pnand %p179_p6, %p173_p3 }
  0x10   :  { %183 = shalt.err (!%p180_p7)
}
  0x11   :  { %s235_s25 = smov 128   ;;  %s236_s26 = smov 8  }
  0x12   :  { %23 = dma.hbm_to_vmem [thread:$0]  %s315_s0, 512, %s18_s16, [#allocation3], %s235_s25, %s235_s25, %s236_s26  }
  0x13   :  { %s237_s29 = smov [#allocation5]   ;;  %s184_s7 = scalar_lea.hbm %s316_s1, 512 }
  0x14   :  { %s29_s30 = sshll.u32 %s237_s29, 4  ;;  %p185_p8 = scmp.ne.s32.totalorder %s316_s1, %s184_s7  ;;  %s30_s30 = int_to_ptr.vmem [resolvable:$true] %s29_s30 }
  0x15   :  { %p188_p9 = scmp.lt.u32.totalorder %s184_s7, %s316_s1 }
  0x17   :  { %p190_p10 = pnand %p188_p9, %p185_p8 }
  0x19   :  { %193 = shalt.err (!%p190_p10)
}
  0x1a   :  { %s194_s12 = scalar_lea.vmem %s30_s30, 512  ;;  %p199_p12 = scmp.lt.s32.totalorder %s30_s30, %s30_s30 }
  0x1b   :  { %p195_p11 = scmp.ne.s32.totalorder %s30_s30, %s194_s12  ;;  %p200_p13 = scmp.lt.s32.totalorder %s194_s12, %s194_s12 }
  0x1d   :  { %p201_p0 = por %p200_p13, %p199_p12 }
  0x1f   :  { %p202_p1 = pnand %p201_p0, %p195_p11 }
  0x21   :  { %205 = shalt.err (!%p202_p1)
}
  0x22   :  { %35 = dma.hbm_to_vmem [thread:$0]  %s316_s1, 512, %s30_s30, [#allocation6], %s235_s25, %s235_s25, %s236_s26  }
  0x23   :  { %228 = dma.done.wait [#allocation3], 512  }
  0x24   :  { %229 = vsyncadd [#allocation3], 4294966784 }
  0x25   :  { %230 = dma.done.wait [#allocation6], 512  }
  0x26   :  { %231 = vsyncadd [#allocation6], 4294966784  ;;  %v46_v0 = vld [vmem:[#allocation2] sm:$0xff]  ;;  %v48_v2 = vld [vmem:[#allocation2 + $0x10] sm:$0xff]  ;;  %s238_s17 = smov [#allocation7]  }
  0x27   :  { %v50_v1 = vld [vmem:[#allocation5] sm:$0xff]  ;;  %v52_v4 = vld [vmem:[#allocation5 + $0x10] sm:$0xff]  ;;  %v47_v5 = vld [vmem:[#allocation2 + $0x8] sm:$0xff] }
  0x28   :  { %v54_v3 = vadd.f32 %v50_v1, %v46_v0  ;;  %v51_v6 = vld [vmem:[#allocation5 + $0x8] sm:$0xff]  ;;  %v56_v7 = vadd.f32 %v52_v4, %v48_v2  ;;  %v49_v8 = vld [vmem:[#allocation2 + $0x18] sm:$0xff]  ;;  %v147_v41 = vld [vmem:[%s317_s2] ss:$0 sm:$0xff]  ;;  %s134_s2 = sshll.u32 %s238_s17, 4  ;;  %s135_s2 = int_to_ptr.vmem [resolvable:$true] %s134_s2 }
  0x29   :  { %v53_v9 = vld [vmem:[#allocation5 + $0x18] sm:$0xff]  ;;  %v55_v10 = vadd.f32 %v51_v6, %v47_v5  ;;  %v148_v43 = vld [vmem:[%s318_s3] ss:$0 sm:$0xff]  ;;  %s206_s3 = scalar_lea.vmem %s135_s2, 512  ;;  %p211_p3 = scmp.lt.s32.totalorder %s135_s2, %s135_s2 }
  0x2a   :  { %60 = vadd.xlane.f32.xlu0 %v54_v3  ;;  %64 = vadd.xlane.f32.xlu1 %v56_v7  ;;  %v57_v11 = vadd.f32 %v53_v9, %v49_v8  ;;  %p207_p2 = scmp.ne.s32.totalorder %s135_s2, %s206_s3  ;;  %p212_p4 = scmp.lt.s32.totalorder %s206_s3, %s206_s3 }
  0x2c   :  { %p213_p5 = por %p212_p4, %p211_p3 }
  0x2e   :  { %62 = vadd.xlane.f32.xlu0 %v55_v10  ;;  %66 = vadd.xlane.f32.xlu1 %v57_v11  ;;  %p214_p6 = pnand %p213_p5, %p207_p2 }
  0xb7   :  { %v61_v12 = vpop.xlane.xlu0 %60  ;;  %v65_v14 = vpop.xlane.xlu1 %64 }
  0xb8   :  { %v69_v13 = vmul.f32 0.0078125, %v61_v12  ;;  %v71_v15 = vmul.f32 0.0078125, %v65_v14 }
  0xba   :  { %v73_v16 = vsub.f32 %v54_v3, %v69_v13  ;;  %v75_v17 = vsub.f32 %v56_v7, %v71_v15 }
  0xbb   :  { %v63_v18 = vpop.xlane.xlu0 %62  ;;  %v67_v21 = vpop.xlane.xlu1 %66 }
  0xbc   :  { %v70_v19 = vmul.f32 0.0078125, %v63_v18  ;;  %v77_v20 = vmul.f32 %v73_v16, %v73_v16  ;;  %v72_v22 = vmul.f32 0.0078125, %v67_v21  ;;  %v79_v24 = vmul.f32 %v75_v17, %v75_v17 }
  0xbe   :  { %v74_v23 = vsub.f32 %v55_v10, %v70_v19  ;;  %81 = vadd.xlane.f32.xlu0 %v77_v20  ;;  %v76_v25 = vsub.f32 %v57_v11, %v72_v22 }
  0xc0   :  { %v78_v26 = vmul.f32 %v74_v23, %v74_v23  ;;  %v80_v27 = vmul.f32 %v76_v25, %v76_v25 }
  0xc2   :  { %85 = vadd.xlane.f32.xlu0 %v79_v24  ;;  %83 = vadd.xlane.f32.xlu1 %v78_v26 }
  0xc6   :  { %87 = vadd.xlane.f32.xlu1 %v80_v27 }
 0x14b   :  { %v82_v28 = vpop.xlane.xlu0 %81 }
 0x14c   :  { %v89_v29 = vmul.f32 0.0078125, %v82_v28 }
 0x14e   :  { %v93_v30 = vadd.f32 1e-12, %v89_v29 }
 0x14f   :  { %v84_v31 = vpop.xlane.xlu1 %83  ;;  %v86_v32 = vpop.xlane.xlu0 %85 }
 0x150   :  { %154 = vrsqrt.f32 %v93_v30  ;;  %v90_v33 = vmul.f32 0.0078125, %v84_v31  ;;  %v91_v34 = vmul.f32 0.0078125, %v86_v32 }
 0x152   :  { %v94_v35 = vadd.f32 1e-12, %v90_v33  ;;  %v95_v36 = vadd.f32 1e-12, %v91_v34 }
 0x153   :  { %v88_v37 = vpop.xlane.xlu1 %87 }
 0x154   :  { %156 = vrsqrt.f32 %v94_v35  ;;  %v92_v38 = vmul.f32 0.0078125, %v88_v37 }
 0x155   :  { %158 = vrsqrt.f32 %v95_v36 }
 0x156   :  { %v96_v39 = vadd.f32 1e-12, %v92_v38 }
 0x158   :  { %160 = vrsqrt.f32 %v96_v39 }
 0x15a   :  { %v155_v40 = vpop.eup %154 }
 0x15b   :  { %v101_v42 = vmul.f32 %v155_v40, %v73_v16 }
 0x15d   :  { %v111_v44 = vmul.f32 %v147_v41, %v101_v42 }
 0x15e   :  { %v157_v45 = vpop.eup %156 }
 0x15f   :  { %v159_v46 = vpop.eup %158  ;;  %v102_v47 = vmul.f32 %v157_v45, %v74_v23  ;;  %v121_v48 = vadd.f32 %v148_v43, %v111_v44 }
 0x160   :  { %v103_v49 = vmul.f32 %v159_v46, %v75_v17 }
 0x161   :  { %v112_v50 = vmul.f32 %v147_v41, %v102_v47  ;;  %125 = vst [vmem:[#allocation7] sm:$0xff] %v121_v48 }
 0x162   :  { %v161_v51 = vpop.eup %160  ;;  %v113_v52 = vmul.f32 %v147_v41, %v103_v49 }
 0x163   :  { %v104_v53 = vmul.f32 %v161_v51, %v76_v25  ;;  %v122_v54 = vadd.f32 %v148_v43, %v112_v50 }
 0x164   :  { %v123_v55 = vadd.f32 %v148_v43, %v113_v52 }
 0x165   :  { %v114_v56 = vmul.f32 %v147_v41, %v104_v53  ;;  %126 = vst [vmem:[#allocation7 + $0x8] sm:$0xff] %v122_v54 }
 0x166   :  { %127 = vst [vmem:[#allocation7 + $0x10] sm:$0xff] %v123_v55 }
 0x167   :  { %v124_v57 = vadd.f32 %v148_v43, %v114_v56 }
 0x169   :  { %128 = vst [vmem:[#allocation7 + $0x18] sm:$0xff] %v124_v57 }
 0x16a   :  { %217 = shalt.err (!%p214_p6)
}
 0x16b   :  { %s218_s20 = scalar_lea.hbm %s319_s4, 512 }
 0x16c   :  { %p219_p7 = scmp.ne.s32.totalorder %s319_s4, %s218_s20  ;;  %p222_p8 = scmp.lt.u32.totalorder %s218_s20, %s319_s4 }
 0x16e   :  { %p224_p9 = pnand %p222_p8, %p219_p7 }
 0x170   :  { %227 = shalt.err (!%p224_p9)
}
 0x171   :  { %140 = dma.vmem_to_hbm [thread:$0]  %s135_s2, 512, %s319_s4, [#allocation4], %s235_s25, %s235_s25, %s236_s26  }
 0x172   :  { %232 = dma.done.wait [#allocation4], 512  }
 0x173   :  { %233 = vsyncadd [#allocation4], 4294966784 }
 0x174   :  { %144 = vsyncpa [#allocation3], 1 }
 0x175   :  { %145 = vsyncpa [#allocation6], 1 }
 0x176   :  { %146 = vsyncpa [#allocation4], 1 }

</bundles_post_ra>
